<compile_context>
chip_gen: v6e
topology: v6e:2x2x1
jax: 0.10.0
libtpu: 0.0.40
codegen_flags: <defaults>
</compile_context>

<pallas_src>
import jax
import jax.numpy as jnp
from jax.experimental import pallas as pl
from jax.experimental.pallas import tpu as pltpu


C_IN = 16
C_MID = 16
C_OUT = 32
BN_EPS = 1e-5


def _proj_head_kernel(x_ref, w1_ref, b1_ref, w2_ref, b2_ref, o_ref):
    # x_ref:  (1, C_IN, tHW)   tile of pixels, channels on sublanes, pixels on lanes
    # w1_ref: (C_MID, C_IN)    conv1 weight with BN1 scale folded in
    # b1_ref: (C_MID, 1)       BN1 shift (applied before ReLU)
    # w2_ref: (C_OUT, C_MID)   conv2 weight with BN2 scale folded in
    # b2_ref: (C_OUT, 1)       BN2 shift
    # o_ref:  (1, C_OUT, tHW)
    x = x_ref[0]                                                  # (C_IN, tHW)
    h = jnp.dot(w1_ref[...], x, preferred_element_type=jnp.float32)
    h = jnp.maximum(h + b1_ref[...], 0.0)                         # BN1 shift + ReLU
    y = jnp.dot(w2_ref[...], h, preferred_element_type=jnp.float32)
    o_ref[0] = (y + b2_ref[...]).astype(o_ref.dtype)              # BN2 shift


def _pick_tile(hw, max_thw):
    """Largest power-of-two multiple of 128 (<= max_thw) dividing hw; else a
    multiple of 128 that forces minimal padding."""
    for cand in (8192, 4096, 2048, 1024, 512, 256, 128):
        if cand <= max_thw and hw % cand == 0:
            return cand
    thw = min(max_thw, 128 * (-(-hw // 128)))
    return max(128, (thw // 128) * 128)


def projection_head_1x1(x_nchw, params, *, max_thw=8192):
    """x_nchw: (N, 16, H, W).  Returns (N, 32, H, W), same dtype as input."""
    N, C, H, W = x_nchw.shape
    assert C == C_IN
    HW = H * W

    # --- fold BN (inference form) into conv weights + per-channel shift ---
    s1 = params["bn1_gamma"] / jnp.sqrt(params["bn1_var"] + BN_EPS)
    b1 = params["bn1_beta"] - params["bn1_mean"] * s1
    s2 = params["bn2_gamma"] / jnp.sqrt(params["bn2_var"] + BN_EPS)
    b2 = params["bn2_beta"] - params["bn2_mean"] * s2

    # PyTorch conv weight is (Cout, Cin, 1, 1).  Keep (Cout, Cin) layout so the
    # kernel computes W @ x with pixels on lanes.  Fold BN scale per out-channel.
    w1 = params["conv1_w"].reshape(C_MID, C_IN).astype(jnp.float32) * s1[:, None]
    w2 = params["conv2_w"].reshape(C_OUT, C_MID).astype(jnp.float32) * s2[:, None]
    b1 = b1.reshape(C_MID, 1).astype(jnp.float32)
    b2 = b2.reshape(C_OUT, 1).astype(jnp.float32)

    # NCHW -> (N, C, HW): free reshape (adjacent trailing dims), no transpose.
    x3d = x_nchw.reshape(N, C_IN, HW)

    thw = _pick_tile(HW, max_thw)
    hw_pad = (-(-HW // thw)) * thw
    if hw_pad != HW:
        # Only happens when HW has no 128-multiple divisor; zero-pad pixels.
        x3d = jnp.pad(x3d, ((0, 0), (0, 0), (0, hw_pad - HW)))

    grid = (N, hw_pad // thw)
    out3d = pl.pallas_call(
        _proj_head_kernel,
        out_shape=jax.ShapeDtypeStruct((N, C_OUT, hw_pad), x_nchw.dtype),
        grid_spec=pltpu.PrefetchScalarGridSpec(
            num_scalar_prefetch=0,
            grid=grid,
            in_specs=[
                pl.BlockSpec((1, C_IN, thw), lambda n, j: (n, 0, j)),   # x tile
                pl.BlockSpec((C_MID, C_IN), lambda n, j: (0, 0)),       # w1 (full)
                pl.BlockSpec((C_MID, 1), lambda n, j: (0, 0)),          # b1
                pl.BlockSpec((C_OUT, C_MID), lambda n, j: (0, 0)),      # w2 (full)
                pl.BlockSpec((C_OUT, 1), lambda n, j: (0, 0)),          # b2
            ],
            out_specs=pl.BlockSpec((1, C_OUT, thw), lambda n, j: (n, 0, j)),
        ),
        compiler_params=pltpu.CompilerParams(
            dimension_semantics=("parallel", "parallel")),
    )(x3d, w1, b1, w2, b2)

    if hw_pad != HW:
        out3d = out3d[:, :, :HW]
    return out3d.reshape(N, C_OUT, H, W)


def _reference(x_nchw, params):
    """Pure-JAX reference of the same (inference-BN) forward."""
    w1 = params["conv1_w"].reshape(C_MID, C_IN)
    w2 = params["conv2_w"].reshape(C_OUT, C_MID)
    x = jnp.einsum("nchw,oc->nohw", x_nchw, w1)
    s1 = params["bn1_gamma"] / jnp.sqrt(params["bn1_var"] + BN_EPS)
    x = (x - params["bn1_mean"][None, :, None, None]) * s1[None, :, None, None] \
        + params["bn1_beta"][None, :, None, None]
    x = jnp.maximum(x, 0.0)
    x = jnp.einsum("nchw,oc->nohw", x, w2)
    s2 = params["bn2_gamma"] / jnp.sqrt(params["bn2_var"] + BN_EPS)
    x = (x - params["bn2_mean"][None, :, None, None]) * s2[None, :, None, None] \
        + params["bn2_beta"][None, :, None, None]
    return x


def _init_params(key):
    ks = jax.random.split(key, 8)
    return {
        # Conv weights in PyTorch layout (Cout, Cin, 1, 1).
        "conv1_w": 0.1 * jax.random.normal(ks[0], (C_MID, C_IN, 1, 1),
                                           jnp.float32),
        "conv2_w": 0.1 * jax.random.normal(ks[1], (C_OUT, C_MID, 1, 1),
                                           jnp.float32),
        # BatchNorm2d(16)
        "bn1_gamma": 1.0 + 0.05 * jax.random.normal(ks[2], (C_MID,), jnp.float32),
        "bn1_beta": 0.05 * jax.random.normal(ks[3], (C_MID,), jnp.float32),
        "bn1_mean": 0.1 * jax.random.normal(ks[4], (C_MID,), jnp.float32),
        "bn1_var": jnp.abs(1.0 + 0.1 * jax.random.normal(ks[5], (C_MID,),
                                                         jnp.float32)),
        # BatchNorm2d(32)
        "bn2_gamma": jnp.ones((C_OUT,), jnp.float32),
        "bn2_beta": jnp.zeros((C_OUT,), jnp.float32),
        "bn2_mean": jnp.zeros((C_OUT,), jnp.float32),
        "bn2_var": jnp.ones((C_OUT,), jnp.float32),
    }


if __name__ == "__main__":
    key = jax.random.PRNGKey(0)
    k_x, k_p = jax.random.split(key)

    N, H, W = 2, 16, 16
    x = jax.random.normal(k_x, (N, C_IN, H, W), jnp.float32)
    params = _init_params(k_p)

    out = projection_head_1x1(x, params)
    out = jax.block_until_ready(out)

    ref = _reference(x, params)
    assert out.shape == (N, C_OUT, H, W), out.shape
    assert jnp.allclose(out, ref, atol=1e-4, rtol=1e-4), \
        float(jnp.max(jnp.abs(out - ref)))

    print("KERNEL_OK")
</pallas_src>

<mosaic_0001>
module attributes {stable_mosaic.version = 11 : i64} {
  func.func @_proj_head_kernel(%arg0: i32, %arg1: i32, %arg2: memref<1x16x256xf32, #tpu.memory_space<vmem>>, %arg3: memref<16x16xf32, #tpu.memory_space<vmem>>, %arg4: memref<16x1xf32, #tpu.memory_space<vmem>>, %arg5: memref<32x16xf32, #tpu.memory_space<vmem>>, %arg6: memref<32x1xf32, #tpu.memory_space<vmem>>, %arg7: memref<1x32x256xf32, #tpu.memory_space<vmem>>) attributes {dimension_semantics = [#tpu.dimension_semantics<parallel>, #tpu.dimension_semantics<parallel>], iteration_bounds = array<i64: 2, 1>, scalar_prefetch = 0 : i64, scratch_operands = 0 : i64, tpu.core_type = #tpu.core_type<tc>, window_params = [{transform_indices = @transform_0, window_bounds = array<i64: 1, 16, 256>}, {pipeline_mode = #tpu.pipeline_mode<synchronous>, transform_indices = @transform_1, window_bounds = array<i64: 16, 16>}, {pipeline_mode = #tpu.pipeline_mode<synchronous>, transform_indices = @transform_2, window_bounds = array<i64: 16, 1>}, {pipeline_mode = #tpu.pipeline_mode<synchronous>, transform_indices = @transform_3, window_bounds = array<i64: 32, 16>}, {pipeline_mode = #tpu.pipeline_mode<synchronous>, transform_indices = @transform_4, window_bounds = array<i64: 32, 1>}, {transform_indices = @transform_5, window_bounds = array<i64: 1, 32, 256>}]} {
    %c0 = arith.constant 0 : index
    %c0_0 = arith.constant 0 : index
    %c0_1 = arith.constant 0 : index
    %0 = vector.load %arg2[%c0, %c0_0, %c0_1] : memref<1x16x256xf32, #tpu.memory_space<vmem>>, vector<1x16x256xf32>
    %1 = vector.shape_cast %0 : vector<1x16x256xf32> to vector<16x256xf32>
    %c0_2 = arith.constant 0 : index
    %c0_3 = arith.constant 0 : index
    %2 = vector.load %arg3[%c0_2, %c0_3] : memref<16x16xf32, #tpu.memory_space<vmem>>, vector<16x16xf32>
    %cst = arith.constant dense<0.000000e+00> : vector<16x256xf32>
    %3 = tpu.matmul %2, %1, %cst {dimension_numbers = #tpu.dot_dimension_numbers<[1], [0], [0], [1], [0, 0, 1, 1], [], []>} : vector<16x16xf32>, vector<16x256xf32>, vector<16x256xf32> -> vector<16x256xf32>
    %c0_4 = arith.constant 0 : index
    %c0_5 = arith.constant 0 : index
    %4 = vector.load %arg4[%c0_4, %c0_5] : memref<16x1xf32, #tpu.memory_space<vmem>>, vector<16x1xf32>
    %5 = vector.broadcast %4 : vector<16x1xf32> to vector<16x256xf32>
    %6 = arith.addf %3, %5 : vector<16x256xf32>
    %cst_6 = arith.constant 0.000000e+00 : f32
    %7 = vector.broadcast %cst_6 : f32 to vector<16x256xf32>
    %8 = arith.maximumf %6, %7 : vector<16x256xf32>
    %c0_7 = arith.constant 0 : index
    %c0_8 = arith.constant 0 : index
    %9 = vector.load %arg5[%c0_7, %c0_8] : memref<32x16xf32, #tpu.memory_space<vmem>>, vector<32x16xf32>
    %cst_9 = arith.constant dense<0.000000e+00> : vector<32x256xf32>
    %10 = tpu.matmul %9, %8, %cst_9 {dimension_numbers = #tpu.dot_dimension_numbers<[1], [0], [0], [1], [0, 0, 1, 1], [], []>} : vector<32x16xf32>, vector<16x256xf32>, vector<32x256xf32> -> vector<32x256xf32>
    %c0_10 = arith.constant 0 : index
    %c0_11 = arith.constant 0 : index
    %11 = vector.load %arg6[%c0_10, %c0_11] : memref<32x1xf32, #tpu.memory_space<vmem>>, vector<32x1xf32>
    %12 = vector.broadcast %11 : vector<32x1xf32> to vector<32x256xf32>
    %13 = arith.addf %10, %12 : vector<32x256xf32>
    %c0_12 = arith.constant 0 : index
    %c0_13 = arith.constant 0 : index
    %c0_14 = arith.constant 0 : index
    %14 = vector.load %arg7[%c0_12, %c0_13, %c0_14] : memref<1x32x256xf32, #tpu.memory_space<vmem>>, vector<1x32x256xf32>
    %15 = vector.shape_cast %14 : vector<1x32x256xf32> to vector<32x256xf32>
    %16 = vector.shape_cast %13 : vector<32x256xf32> to vector<1x32x256xf32>
    tpu.vector_store %arg7[%c0_12, %c0_13, %c0_14], %16 {strides = array<i32>} : memref<1x32x256xf32, #tpu.memory_space<vmem>>, vector<1x32x256xf32>,
    return
  }
  func.func @transform_0(%arg0: i32, %arg1: i32) -> (i32, i32, i32) {
    %c0_i32 = arith.constant 0 : i32
    %c0_i32_0 = arith.constant 0 : i32
    return %arg0, %c0_i32, %arg1 : i32, i32, i32
  }
  func.func @transform_1(%arg0: i32, %arg1: i32) -> (i32, i32) {
    %c0_i32 = arith.constant 0 : i32
    %c0_i32_0 = arith.constant 0 : i32
    %c0_i32_1 = arith.constant 0 : i32
    return %c0_i32, %c0_i32_0 : i32, i32
  }
  func.func @transform_2(%arg0: i32, %arg1: i32) -> (i32, i32) {
    %c0_i32 = arith.constant 0 : i32
    %c0_i32_0 = arith.constant 0 : i32
    %c0_i32_1 = arith.constant 0 : i32
    return %c0_i32, %c0_i32_0 : i32, i32
  }
  func.func @transform_3(%arg0: i32, %arg1: i32) -> (i32, i32) {
    %c0_i32 = arith.constant 0 : i32
    %c0_i32_0 = arith.constant 0 : i32
    %c0_i32_1 = arith.constant 0 : i32
    return %c0_i32, %c0_i32_0 : i32, i32
  }
  func.func @transform_4(%arg0: i32, %arg1: i32) -> (i32, i32) {
    %c0_i32 = arith.constant 0 : i32
    %c0_i32_0 = arith.constant 0 : i32
    %c0_i32_1 = arith.constant 0 : i32
    return %c0_i32, %c0_i32_0 : i32, i32
  }
  func.func @transform_5(%arg0: i32, %arg1: i32) -> (i32, i32, i32) {
    %c0_i32 = arith.constant 0 : i32
    %c0_i32_0 = arith.constant 0 : i32
    return %arg0, %c0_i32, %arg1 : i32, i32, i32
  }
}

</mosaic_0001>

<bundles_post_ra>
// kernel: tpu_custom_call.1
= control target key start
LH: loop header
LB: loop body
LE: loop exit
PB: predicated region body
PF: predicated region fallthrough
CT: control target
= control target key end

     0   :  { %10 = vsyncpa [#allocation3], 0  ;;  %s957_s0 = inlined_call_operand.vmem [shape: f32[2,16,256], index: 0, kind: input, shape index: {}]   ;;  %s958_s1 = inlined_call_operand.vmem [shape: f32[16,16], index: 1, kind: input, shape index: {}]   ;;  %s959_s2 = inlined_call_operand.vmem [shape: f32[16,1], index: 2, kind: input, shape index: {}]   ;;  %s960_s3 = inlined_call_operand.vmem [shape: f32[32,16], index: 3, kind: input, shape index: {}]   ;;  %s961_s4 = inlined_call_operand.vmem [shape: f32[32,1], index: 4, kind: input, shape index: {}]   ;;  %s962_s5 = inlined_call_operand.hbm [shape: f32[2,32,256], index: 5, kind: output, shape index: {}]  }
   0x1   :  { %12 = vsyncpa [#allocation3 + $0x1], 0  ;;  %s791_s18 = smov 0   ;;  %s793_s19 = smov 0  }
   0x2   :  { %s795_s20 = smov 0   ;;  %s797_s21 = smov 0  }
   0x3   :  { %s799_s22 = smov 0   ;;  %s801_s23 = smov 0  }
   0x4 LB: > { %s592_s24 = sadd.s32 4294967295, %s754_s23   ;;  %s593_s25 = sadd.s32 4294967294, %s754_s23   ;;  %s754_s23 = sphi %s801_s23, %s18_s23   ;;  %s750_s22 = sphi %s799_s22, %s969_s22   ;;  %s746_s21 = sphi %s797_s21, %s968_s21   ;;  %s742_s20 = sphi %s795_s20, %s967_s20   ;;  %s738_s19 = sphi %s793_s19, %s966_s19   ;;  %s734_s18 = sphi %s791_s18, %s965_s18  }
   0x5   : > { %s30_s26 = sadd.s32 1, %s750_s22  ;;  %s151_s27 = sadd.s32 1, %s742_s20 }
   0x6   : > { %p32_p0 = scmp.ge.s32.totalorder %s30_s26, 2  ;;  %p161_p1 = scmp.ne.s32.totalorder %s742_s20, %s738_s19 }
   0x7   : > { %p162_p2 = scmp.eq.s32.totalorder %s592_s24, 1  ;;  %p167_p3 = scmp.ne.s32.totalorder %s738_s19, %s734_s18 }
   0x8   : > { %s971_s26 = smov (%p32_p0, %s30_s26), 0  ;;  %p168_p5 = scmp.eq.s32.totalorder %s593_s25, 1 }
   0x9   : > { %p831_p4 = por %p162_p2, %p161_p1  ;;  %s146_s29 = ssub.s32 %s750_s22, %s971_s26 }
   0xa   : > { %p596_p6 = scmp.ge.s32.totalorder %s754_s23, 1  ;;  %p149_p7 = scmp.eq.s32.totalorder %s146_s29, 0 }
   0xb   : > { %p838_p8 = por %p168_p5, %p167_p3  ;;  %p211_p9 = scmp.lt.s32.totalorder %s754_s23, 3 }
   0xc   : > { %s844_s6 = scalar_select %p149_p7, %s742_s20, %s151_s27  }
   0xd   : > { %p212_p10 = pnand %p596_p6, %p211_p9 }
   0xe   : > { %p244_p11 = scmp.lt.s32.totalorder (!%p212_p10), %s746_s21, 1  ;;  %s240_s29 = sand.u32 (!%p212_p10), 1, %s738_s19  }
   0xf   : > { %215 = sbr.rel (%p212_p10) target bundleno = 455 (0x1c7), region = 40  ;;  %s597_s7 = sshll.u32 (!%p212_p10), %s240_s29, 6 }
  0x10   : > { %s242_s8 = scalar_lea.vmem (!%p212_p10), [#allocation2], %s597_s7 }
  0x11   : > { %s513_s10 = sshll.u32 (!%p212_p10), %s242_s8, 4  ;;  %s908_s10 = int_to_ptr.vmem [resolvable:$true] %s513_s10 }
  0x12   : > { %s678_s14 = scalar_lea.vmem (!%p212_p10), %s908_s10, 1024 }
  0x13   : > { %p679_p12 = scmp.ne.s32.totalorder (!%p212_p10), %s908_s10, %s678_s14 }
  0x14   : > { %v756_v0 = vmov 0.0   ;;  %v757_v1 = vmov 0   ;;  %v261_v2 = vld [vmem:[%s959_s2 + $0x8] sm:$0xff]  ;;  %s245_s9 = scalar_select %p244_p11, %s746_s21, 1  ;;  %v260_v3 = vld [vmem:[%s959_s2] sm:$0xff]  ;;  %v366_v8 = vld [vmem:[%s961_s4 + $0x10] sm:$0xff] }
  0x15   : > { %343 = vmatprep.mubr.f32.mxu0 %v756_v0  ;;  %676 = vset.pattern.permute.xlu0 %v757_v1  ;;  %v258_v9 = vld [vmem:[%s958_s1] sm:$0xff]  ;;  %vm272_vm0 = vcmask 130048   ;;  %v259_v10 = vld [vmem:[%s958_s1 + $0x8] sm:$0xff]  ;;  %v367_v13 = vld [vmem:[%s961_s4 + $0x18] sm:$0xff]  ;;  %p680_p13 = pnand %p679_p12, %p831_p4 }
  0x16   : > { %269 = vperm.xlu0 %676, %v261_v2   ;;  %470 = vmatprep.mubr.f32.mxu1 %v756_v0  ;;  %s611_s12 = sshll.u32 %s245_s9, 5  ;;  %v364_v11 = vld [vmem:[%s961_s4] sm:$0xff]  ;;  %v365_v12 = vld [vmem:[%s961_s4 + $0x8] sm:$0xff]  ;;  %v362_v30 = vld [vmem:[%s960_s3 + $0x10] sm:$0xff]  ;;  %s612_s9 = sshll.u32 %s746_s21, 10 }
  0x17   : > { %677 = vset.pattern.permute.xlu1 %v757_v1  ;;  %s251_s15 = scalar_lea.vmem %s957_s0, %s611_s12  ;;  %v360_v28 = vld [vmem:[%s960_s3] sm:$0xff]  ;;  %v361_v29 = vld [vmem:[%s960_s3 + $0x8] sm:$0xff]  ;;  %v363_v31 = vld [vmem:[%s960_s3 + $0x18] sm:$0xff]  ;;  %s906_s13 = scalar_lea.hbm %s962_s5, %s612_s9 }
  0x18   : > { %v257_v4 = vld [vmem:[%s251_s15 + $0x18] sm:$0xff]  ;;  %v256_v5 = vld [vmem:[%s251_s15 + $0x10] sm:$0xff]  ;;  %v255_v6 = vld [vmem:[%s251_s15 + $0x8] sm:$0xff]  ;;  %370 = vperm.xlu1 %677, %v364_v11   ;;  %s912_s21 = scalar_lea.sflag [#allocation3], %s240_s29  ;;  %p681_p0 = pneg %p680_p13 }
  0x19   : > { %307 = vmatprep.subr.mxu0 %v257_v4  ;;  %v254_v7 = vld [vmem:[%s251_s15] sm:$0xff]  ;;  %s758_s15 = smov [#allocation2]  }
  0x1a   : > { %264 = vperm.xlu0 %676, %v260_v3   ;;  %308 = vmatpush1.msra.mxu0 %v256_v5  ;;  %s682_s16 = sshll.u32 %s758_s15, 4  ;;  %s683_s16 = int_to_ptr.vmem [resolvable:$false] %s682_s16 }
  0x1b   : > { %309 = vmatprep.subr.mxu0 %v255_v6  ;;  %s684_s17 = scalar_lea.vmem %s683_s16, 2048  ;;  %p685_p1 = scmp.lt.s32.totalorder %s908_s10, %s683_s16 }
  0x1c   : > { %310 = vmatpush1.msra.mxu0 %v254_v7  ;;  %375 = vperm.xlu1 %677, %v365_v12   ;;  %p686_p2 = scmp.lt.s32.totalorder %s684_s17, %s678_s14 }
  0x1d   : > { %600 = vmatmul.mubr.msk.f32.vlgmr.msra.gmra.mxu0 %vm272_vm0, %v258_v9 }
  0x1e   : > { %380 = vperm.xlu0 %676, %v366_v8   ;;  %349 = vmatprep.mubr.f32.mxu0 %v756_v0  ;;  %p687_p3 = por %p686_p2, %p685_p1 }
  0x20   : > { %385 = vperm.xlu1 %677, %v367_v13   ;;  %p688_p5 = pnand %p687_p3, %p681_p0 }
  0x21   : > { %601 = vmatmul.mubr.msk.f32.gmra.mxu0 %vm272_vm0, %v259_v10 }
  0x22   : > { %464 = vmatprep.mubr.f32.mxu0 %v756_v0 }
  0x91   : > { %v270_v14 = vpop.permute.xlu0 %269 }
  0x93   : > { %v371_v32 = vpop.permute.xlu1 %370 }
  0x95   : > { %v265_v18 = vpop.permute.xlu0 %264 }
  0x97   : > { %v376_v33 = vpop.permute.xlu1 %375 }
  0x99   : > { %v381_v42 = vpop.permute.xlu0 %380 }
  0x9b   : > { %v386_v47 = vpop.permute.xlu1 %385 }
  0xdd   : > { %v345_v15 = vpop.f32.mrf.mxu0 }
  0xde   : > { %v346_v23 = vadd.f32 %v345_v15, %v265_v18 }
  0xdf   : > { %v347_v16 = vpop.f32.mrf.mxu0 }
  0xe0   : > { %v348_v21 = vadd.f32 %v347_v16, %v265_v18  ;;  %v356_v27 = vmax.f32 %v346_v23, 0.0 }
  0xe1   : > { %v351_v17 = vpop.f32.mrf.mxu0 }
  0xe2   : > { %v352_v19 = vadd.f32 %v351_v17, %v270_v14  ;;  %v357_v26 = vmax.f32 %v348_v21, 0.0 }
  0xe3   : > { %v353_v20 = vpop.f32.mrf.mxu0 }
  0xe4   : > { %v354_v22 = vadd.f32 %v353_v20, %v270_v14  ;;  %v358_v25 = vmax.f32 %v352_v19, 0.0 }
  0xe6   : > { %v359_v24 = vmax.f32 %v354_v22, 0.0 }
  0xe8   : > { %428 = vmatprep.subr.mxu0 %v359_v24  ;;  %613 = vmatprep.subr.mxu1 %v359_v24 }
  0xe9   : > { %429 = vmatpush1.msra.mxu0 %v358_v25  ;;  %615 = vmatpush1.msra.mxu1 %v358_v25 }
  0xea   : > { %430 = vmatprep.subr.mxu0 %v357_v26  ;;  %614 = vmatprep.subr.mxu1 %v357_v26 }
  0xeb   : > { %431 = vmatpush1.msra.mxu0 %v356_v27  ;;  %616 = vmatpush1.msra.mxu1 %v356_v27 }
  0xec   : > { %602 = vmatmul.mubr.msk.f32.vlgmr.msra.gmra.mxu0 %vm272_vm0, %v360_v28  ;;  %603 = vmatmul.mubr.msk.f32.vlgmr.msra.gmra.mxu1 %vm272_vm0, %v361_v29 }
  0xed   : > { %476 = vmatprep.mubr.f32.mxu1 %v756_v0 }
  0xf0   : > { %604 = vmatmul.mubr.msk.f32.gmra.mxu1 %vm272_vm0, %v362_v30 }
  0xf1   : > { %482 = vmatprep.mubr.f32.mxu1 %v756_v0 }
  0xf4   : > { %605 = vmatmul.mubr.msk.f32.gmra.mxu1 %vm272_vm0, %v363_v31 }
 0x1ac   : > { %v466_v34 = vpop.f32.mrf.mxu0  ;;  %v472_v35 = vpop.f32.mrf.mxu1 }
 0x1ad   : > { %v467_v36 = vadd.f32 %v466_v34, %v371_v32  ;;  %v473_v37 = vadd.f32 %v472_v35, %v376_v33 }
 0x1ae   : > { %v468_v38 = vpop.f32.mrf.mxu0  ;;  %v474_v39 = vpop.f32.mrf.mxu1 }
 0x1af   : > { %489 = vst [vmem:[%s242_s8] sm:$0xff] %v467_v36  ;;  %491 = vst [vmem:[%s242_s8 + $0x10] sm:$0xff] %v473_v37  ;;  %v469_v40 = vadd.f32 %v468_v38, %v371_v32  ;;  %v475_v41 = vadd.f32 %v474_v39, %v376_v33 }
 0x1b0   : > { %v478_v43 = vpop.f32.mrf.mxu1 }
 0x1b1   : > { %490 = vst [vmem:[%s242_s8 + $0x8] sm:$0xff] %v469_v40  ;;  %492 = vst [vmem:[%s242_s8 + $0x18] sm:$0xff] %v475_v41  ;;  %v479_v44 = vadd.f32 %v478_v43, %v381_v42 }
 0x1b2   : > { %v480_v45 = vpop.f32.mrf.mxu1 }
 0x1b3   : > { %493 = vst [vmem:[%s242_s8 + $0x20] sm:$0xff] %v479_v44  ;;  %v481_v46 = vadd.f32 %v480_v45, %v381_v42 }
 0x1b4   : > { %v484_v48 = vpop.f32.mrf.mxu1 }
 0x1b5   : > { %494 = vst [vmem:[%s242_s8 + $0x28] sm:$0xff] %v481_v46  ;;  %v485_v49 = vadd.f32 %v484_v48, %v386_v47 }
 0x1b6   : > { %v486_v50 = vpop.f32.mrf.mxu1 }
 0x1b7   : > { %495 = vst [vmem:[%s242_s8 + $0x30] sm:$0xff] %v485_v49  ;;  %v487_v51 = vadd.f32 %v486_v50, %v386_v47 }
 0x1b9   : > { %496 = vst [vmem:[%s242_s8 + $0x38] sm:$0xff] %v487_v51 }
 0x1ba   : > { %691 = shalt.err (!%p688_p5)
}
 0x1bb   : > { %s692_s24 = scalar_lea.hbm %s906_s13, 1024  ;;  %s696_s29 = scalar_lea.hbm %s962_s5, 2048 }
 0x1bc   : > { %p693_p6 = scmp.ne.s32.totalorder %s906_s13, %s692_s24  ;;  %p697_p10 = scmp.lt.s32.totalorder %s906_s13, %s962_s5 }
 0x1bd   : > { %p698_p11 = scmp.lt.s32.totalorder %s696_s29, %s692_s24 }
 0x1be   : > { %p694_p7 = pnand %p693_p6, %p831_p4 }
 0x1bf   : > { %p699_p12 = por %p698_p11, %p697_p10 }
 0x1c0   : > { %p695_p9 = pneg %p694_p7 }
 0x1c2   : > { %p700_p13 = pnand %p699_p12, %p695_p9 }
 0x1c4   : > { %703 = shalt.err (!%p700_p13)
}
 0x1c5   : > { %s759_s9 = smov 256   ;;  %s760_s11 = smov 16  }
 0x1c6   : > { %617 = dma.vmem_to_hbm [thread:$0]  (%p831_p4), %s908_s10, 1024, %s906_s13, %s912_s21, %s759_s9, %s759_s9, %s760_s11  }
 0x1c7 PF: > { %p623_p0 = scmp.ge.s32.totalorder %s754_s23, 2  ;;  %s528_s12 = sand.u32 1, %s734_s18  }
 0x1c8   : > { %s529_s14 = scalar_lea.sflag [#allocation3], %s528_s12 }
 0x1c9   : > { %p620_p1 = pnand %p623_p0, %p838_p8 }
 0x1cb   : > { %p621_p2 = pneg %p620_p1 }
 0x1cd   : > { %729 = dma.done.wait (%p621_p2), %s529_s14, 1024  }
 0x1ce   : > { %731 = vsyncadd (%p621_p2), %s529_s14, 4294966272  ;;  %s18_s23 = sadd.s32 1, %s754_s23   ;;  %s965_s18 = smov %s738_s19 }
 0x1cf   : > { %p15_p3 = scmp.ge.s32.totalorder %s18_s23, 4   ;;  %s966_s19 = smov %s742_s20 }
 0x1d0   : > { %s967_s20 = smov %s844_s6  ;;  %s968_s21 = smov %s750_s22 }
 0x1d1   : > { %s969_s22 = smov %s971_s26  ;;  %17 = sbr.rel (!%p15_p3) target bundleno = 4 (0x4), region = 75 }
 0x1d6   :  { %534 = vsyncpa [#allocation3], 1 }
 0x1d7   :  { %536 = vsyncpa [#allocation3 + $0x1], 1 }

</bundles_post_ra>
